<compile_context>
chip_gen: v7x
topology: tpu7x:2x2x1
jax: 0.10.0
libtpu: 0.0.40
codegen_flags: <defaults>
</compile_context>

<pallas_src>
import functools

import jax
import jax.numpy as jnp
import numpy as np
from jax.experimental import pallas as pl
from jax.experimental.pallas import tpu as pltpu


def _mlp_kernel(x_ref,
                w1_ref, b1_ref, w2_ref, b2_ref, w3_ref, b3_ref,
                w4_ref, b4_ref, w5_ref, b5_ref,
                o_ref):
    """Fused 5-layer MLP with residuals; batch on the lane axis.

    x_ref:  [D_in, tm]      wK_ref: [out_k, in_k]    bK_ref: [out_k, 1]
    o_ref:  [D_out, tm]
    Scale s is already folded into w1..w4 / b1..b4 on the host.
    """
    x = x_ref[...]

    def layer(w_ref, a, b_ref):
        return jnp.dot(w_ref[...], a, preferred_element_type=jnp.float32) + b_ref[...]

    y1 = jnp.tanh(layer(w1_ref, x, b1_ref))
    y2 = jnp.tanh(layer(w2_ref, y1, b2_ref))
    y3 = jnp.tanh(layer(w3_ref, y2, b3_ref)) + y1
    y4 = jnp.tanh(layer(w4_ref, y3, b4_ref)) + y2
    y = layer(w5_ref, y4, b5_ref)
    o_ref[...] = y.astype(o_ref.dtype)


@functools.partial(jax.jit, static_argnames=("tm",))
def homo_forward(x, kparams, *, tm=256):
    """x: [N, D_in] float32. kparams: scale-folded params, torch layout
    (weights [out, in], biases [out, 1])."""
    N, D_in = x.shape
    H = kparams["w1"].shape[0]
    D_out = kparams["w5"].shape[0]

    # Batch on the 128-lane axis.
    xt = x.T                                           # [D_in, N]

    # Lane-aligned batch tile; when the batch is big enough, use >= 2 grid steps
    # so both v7x TensorCores get work (on v5e/v6e extra steps are harmless).
    tm = max(128, (tm // 128) * 128)
    n_blocks = pl.cdiv(N, tm)
    if n_blocks == 1 and N > 128:
        tm = pl.cdiv(pl.cdiv(N, 2), 128) * 128
        n_blocks = pl.cdiv(N, tm)
    N_pad = n_blocks * tm
    if N_pad != N:
        xt = jnp.pad(xt, ((0, 0), (0, N_pad - N)))     # ragged batch handled by padding

    full = lambda shape: pl.BlockSpec(shape, lambda i: (0, 0))   # grid-invariant (resident)

    grid_spec = pltpu.PrefetchScalarGridSpec(
        num_scalar_prefetch=0,
        grid=(n_blocks,),
        in_specs=[
            pl.BlockSpec((D_in, tm), lambda i: (0, i)),          # x tile [D_in, tm]
            full((H, D_in)),  full((H, 1)),                      # W1, b1 (scale-folded)
            full((H, H)),     full((H, 1)),                      # W2, b2 (scale-folded)
            full((H, H)),     full((H, 1)),                      # W3, b3 (scale-folded)
            full((H, H)),     full((H, 1)),                      # W4, b4 (scale-folded)
            full((D_out, H)), full((D_out, 1)),                  # W5, b5
        ],
        out_specs=pl.BlockSpec((D_out, tm), lambda i: (0, i)),   # lane-dense output
    )

    out_t = pl.pallas_call(
        _mlp_kernel,
        out_shape=jax.ShapeDtypeStruct((D_out, N_pad), jnp.float32),
        grid_spec=grid_spec,
        compiler_params=pltpu.CompilerParams(
            dimension_semantics=("parallel",)),
    )(xt,
      kparams["w1"], kparams["b1"], kparams["w2"], kparams["b2"],
      kparams["w3"], kparams["b3"], kparams["w4"], kparams["b4"],
      kparams["w5"], kparams["b5"])

    return out_t[:, :N].T                              # back to [N, D_out]


def init_params(key, D_in, H, D_out):
    """Deterministic init mirroring the torch.nn.init.normal_ calls (torch layout)."""
    ks = jax.random.split(key, 10)

    def nrm(k, shape, std):
        return jax.random.normal(k, shape, jnp.float32) * std

    raw = {
        # torch Linear layout: weight [out, in], bias [out]
        "w1": nrm(ks[0], (H, D_in),  np.sqrt(2.0 / (D_in + H))),
        "w2": nrm(ks[1], (H, H),     np.sqrt(2.0 / (H + H))),
        "w3": nrm(ks[2], (H, H),     np.sqrt(2.0 / (H + H))),
        "w4": nrm(ks[3], (H, H),     np.sqrt(2.0 / (H + H))),
        "w5": nrm(ks[4], (D_out, H), np.sqrt(2.0 / (H + D_out))),
        "b1": nrm(ks[5], (H,), 1.0),
        "b2": nrm(ks[6], (H,), 1.0),
        "b3": nrm(ks[7], (H,), 1.0),
        "b4": nrm(ks[8], (H,), 1.0),
        "b5": nrm(ks[9], (D_out,), 1.0),
    }
    a1 = jnp.float32(0.1)
    n = 1.0 / a1             # self.n = 1 / self.a1.data
    scale = n * a1           # factor applied before every tanh
    return raw, scale


def prep_kernel_params(raw, scale):
    """One-time host transform: fold scale into layers 1-4, biases -> [out, 1]."""
    kp = {}
    for l in (1, 2, 3, 4):
        kp[f"w{l}"] = scale * raw[f"w{l}"]
        kp[f"b{l}"] = (scale * raw[f"b{l}"])[:, None]
    kp["w5"] = raw["w5"]
    kp["b5"] = raw["b5"][:, None]
    return kp


def reference_forward(x, raw, scale):
    def lin(a, w, b):
        return a @ w.T + b
    y1 = jnp.tanh(scale * lin(x, raw["w1"], raw["b1"]))
    y2 = jnp.tanh(scale * lin(y1, raw["w2"], raw["b2"]))
    y3 = jnp.tanh(scale * lin(y2, raw["w3"], raw["b3"])) + y1
    y4 = jnp.tanh(scale * lin(y3, raw["w4"], raw["b4"])) + y2
    return lin(y4, raw["w5"], raw["b5"])


if __name__ == "__main__":
    D_in, H, D_out = 2, 32, 1      # (x, y) collocation coords -> scalar field, hidden=32
    N = 512                        # collocation points -> 2 lane-dense grid steps

    key = jax.random.PRNGKey(0)
    kx, kp = jax.random.split(key)
    x = jax.random.uniform(kx, (N, D_in), jnp.float32, minval=-1.0, maxval=1.0)

    raw_params, scale = init_params(kp, D_in, H, D_out)
    kparams = prep_kernel_params(raw_params, scale)

    out = homo_forward(x, kparams, tm=256)
    out = jax.block_until_ready(out)

    ref = reference_forward(x, raw_params, scale)
    assert out.shape == (N, D_out)
    assert jnp.allclose(out, ref, atol=1e-4, rtol=1e-3), "mismatch vs reference"

    print("KERNEL_OK")
</pallas_src>

<mosaic_0001>
module attributes {stable_mosaic.version = 11 : i64} {
  func.func @_mlp_kernel(%arg0: i32, %arg1: memref<2x256xf32, #tpu.memory_space<vmem>>, %arg2: memref<32x2xf32, #tpu.memory_space<vmem>>, %arg3: memref<32x1xf32, #tpu.memory_space<vmem>>, %arg4: memref<32x32xf32, #tpu.memory_space<vmem>>, %arg5: memref<32x1xf32, #tpu.memory_space<vmem>>, %arg6: memref<32x32xf32, #tpu.memory_space<vmem>>, %arg7: memref<32x1xf32, #tpu.memory_space<vmem>>, %arg8: memref<32x32xf32, #tpu.memory_space<vmem>>, %arg9: memref<32x1xf32, #tpu.memory_space<vmem>>, %arg10: memref<1x32xf32, #tpu.memory_space<vmem>>, %arg11: memref<1x1xf32, #tpu.memory_space<vmem>>, %arg12: memref<1x256xf32, #tpu.memory_space<vmem>>) attributes {dimension_semantics = [#tpu.dimension_semantics<parallel>], iteration_bounds = array<i64: 2>, scalar_prefetch = 0 : i64, scratch_operands = 0 : i64, tpu.core_type = #tpu.core_type<tc>, window_params = [{transform_indices = @transform_0, window_bounds = array<i64: 2, 256>}, {pipeline_mode = #tpu.pipeline_mode<synchronous>, transform_indices = @transform_1, window_bounds = array<i64: 32, 2>}, {pipeline_mode = #tpu.pipeline_mode<synchronous>, transform_indices = @transform_2, window_bounds = array<i64: 32, 1>}, {pipeline_mode = #tpu.pipeline_mode<synchronous>, transform_indices = @transform_3, window_bounds = array<i64: 32, 32>}, {pipeline_mode = #tpu.pipeline_mode<synchronous>, transform_indices = @transform_4, window_bounds = array<i64: 32, 1>}, {pipeline_mode = #tpu.pipeline_mode<synchronous>, transform_indices = @transform_5, window_bounds = array<i64: 32, 32>}, {pipeline_mode = #tpu.pipeline_mode<synchronous>, transform_indices = @transform_6, window_bounds = array<i64: 32, 1>}, {pipeline_mode = #tpu.pipeline_mode<synchronous>, transform_indices = @transform_7, window_bounds = array<i64: 32, 32>}, {pipeline_mode = #tpu.pipeline_mode<synchronous>, transform_indices = @transform_8, window_bounds = array<i64: 32, 1>}, {pipeline_mode = #tpu.pipeline_mode<synchronous>, transform_indices = @transform_9, window_bounds = array<i64: 1, 32>}, {pipeline_mode = #tpu.pipeline_mode<synchronous>, transform_indices = @transform_10, window_bounds = array<i64: 1, 1>}, {transform_indices = @transform_11, window_bounds = array<i64: 1, 256>}]} {
    %c0 = arith.constant 0 : index
    %c0_0 = arith.constant 0 : index
    %0 = vector.load %arg1[%c0, %c0_0] : memref<2x256xf32, #tpu.memory_space<vmem>>, vector<2x256xf32>
    %c0_1 = arith.constant 0 : index
    %c0_2 = arith.constant 0 : index
    %1 = vector.load %arg2[%c0_1, %c0_2] : memref<32x2xf32, #tpu.memory_space<vmem>>, vector<32x2xf32>
    %cst = arith.constant dense<0.000000e+00> : vector<32x256xf32>
    %2 = tpu.matmul %1, %0, %cst {dimension_numbers = #tpu.dot_dimension_numbers<[1], [0], [0], [1], [0, 0, 1, 1], [], []>} : vector<32x2xf32>, vector<2x256xf32>, vector<32x256xf32> -> vector<32x256xf32>
    %c0_3 = arith.constant 0 : index
    %c0_4 = arith.constant 0 : index
    %3 = vector.load %arg3[%c0_3, %c0_4] : memref<32x1xf32, #tpu.memory_space<vmem>>, vector<32x1xf32>
    %4 = vector.broadcast %3 : vector<32x1xf32> to vector<32x256xf32>
    %5 = arith.addf %2, %4 : vector<32x256xf32>
    %6 = math.tanh %5 : vector<32x256xf32>
    %c0_5 = arith.constant 0 : index
    %c0_6 = arith.constant 0 : index
    %7 = vector.load %arg4[%c0_5, %c0_6] : memref<32x32xf32, #tpu.memory_space<vmem>>, vector<32x32xf32>
    %cst_7 = arith.constant dense<0.000000e+00> : vector<32x256xf32>
    %8 = tpu.matmul %7, %6, %cst_7 {dimension_numbers = #tpu.dot_dimension_numbers<[1], [0], [0], [1], [0, 0, 1, 1], [], []>} : vector<32x32xf32>, vector<32x256xf32>, vector<32x256xf32> -> vector<32x256xf32>
    %c0_8 = arith.constant 0 : index
    %c0_9 = arith.constant 0 : index
    %9 = vector.load %arg5[%c0_8, %c0_9] : memref<32x1xf32, #tpu.memory_space<vmem>>, vector<32x1xf32>
    %10 = vector.broadcast %9 : vector<32x1xf32> to vector<32x256xf32>
    %11 = arith.addf %8, %10 : vector<32x256xf32>
    %12 = math.tanh %11 : vector<32x256xf32>
    %c0_10 = arith.constant 0 : index
    %c0_11 = arith.constant 0 : index
    %13 = vector.load %arg6[%c0_10, %c0_11] : memref<32x32xf32, #tpu.memory_space<vmem>>, vector<32x32xf32>
    %cst_12 = arith.constant dense<0.000000e+00> : vector<32x256xf32>
    %14 = tpu.matmul %13, %12, %cst_12 {dimension_numbers = #tpu.dot_dimension_numbers<[1], [0], [0], [1], [0, 0, 1, 1], [], []>} : vector<32x32xf32>, vector<32x256xf32>, vector<32x256xf32> -> vector<32x256xf32>
    %c0_13 = arith.constant 0 : index
    %c0_14 = arith.constant 0 : index
    %15 = vector.load %arg7[%c0_13, %c0_14] : memref<32x1xf32, #tpu.memory_space<vmem>>, vector<32x1xf32>
    %16 = vector.broadcast %15 : vector<32x1xf32> to vector<32x256xf32>
    %17 = arith.addf %14, %16 : vector<32x256xf32>
    %18 = math.tanh %17 : vector<32x256xf32>
    %19 = arith.addf %18, %6 : vector<32x256xf32>
    %c0_15 = arith.constant 0 : index
    %c0_16 = arith.constant 0 : index
    %20 = vector.load %arg8[%c0_15, %c0_16] : memref<32x32xf32, #tpu.memory_space<vmem>>, vector<32x32xf32>
    %cst_17 = arith.constant dense<0.000000e+00> : vector<32x256xf32>
    %21 = tpu.matmul %20, %19, %cst_17 {dimension_numbers = #tpu.dot_dimension_numbers<[1], [0], [0], [1], [0, 0, 1, 1], [], []>} : vector<32x32xf32>, vector<32x256xf32>, vector<32x256xf32> -> vector<32x256xf32>
    %c0_18 = arith.constant 0 : index
    %c0_19 = arith.constant 0 : index
    %22 = vector.load %arg9[%c0_18, %c0_19] : memref<32x1xf32, #tpu.memory_space<vmem>>, vector<32x1xf32>
    %23 = vector.broadcast %22 : vector<32x1xf32> to vector<32x256xf32>
    %24 = arith.addf %21, %23 : vector<32x256xf32>
    %25 = math.tanh %24 : vector<32x256xf32>
    %26 = arith.addf %25, %12 : vector<32x256xf32>
    %c0_20 = arith.constant 0 : index
    %c0_21 = arith.constant 0 : index
    %27 = vector.load %arg10[%c0_20, %c0_21] : memref<1x32xf32, #tpu.memory_space<vmem>>, vector<1x32xf32>
    %cst_22 = arith.constant dense<0.000000e+00> : vector<1x256xf32>
    %28 = tpu.matmul %27, %26, %cst_22 {dimension_numbers = #tpu.dot_dimension_numbers<[1], [0], [0], [1], [0, 0, 1, 1], [], []>} : vector<1x32xf32>, vector<32x256xf32>, vector<1x256xf32> -> vector<1x256xf32>
    %c0_23 = arith.constant 0 : index
    %c0_24 = arith.constant 0 : index
    %29 = vector.load %arg11[%c0_23, %c0_24] : memref<1x1xf32, #tpu.memory_space<vmem>>, vector<1x1xf32>
    %30 = vector.broadcast %29 : vector<1x1xf32> to vector<1x256xf32>
    %31 = arith.addf %28, %30 : vector<1x256xf32>
    %c0_25 = arith.constant 0 : index
    %c0_26 = arith.constant 0 : index
    %32 = vector.load %arg12[%c0_25, %c0_26] : memref<1x256xf32, #tpu.memory_space<vmem>>, vector<1x256xf32>
    tpu.vector_store %arg12[%c0_25, %c0_26], %31 {strides = array<i32>} : memref<1x256xf32, #tpu.memory_space<vmem>>, vector<1x256xf32>,
    return
  }
  func.func @transform_0(%arg0: i32) -> (i32, i32) {
    %c0_i32 = arith.constant 0 : i32
    %c0_i32_0 = arith.constant 0 : i32
    return %c0_i32, %arg0 : i32, i32
  }
  func.func @transform_1(%arg0: i32) -> (i32, i32) {
    %c0_i32 = arith.constant 0 : i32
    %c0_i32_0 = arith.constant 0 : i32
    %c0_i32_1 = arith.constant 0 : i32
    return %c0_i32, %c0_i32_0 : i32, i32
  }
  func.func @transform_2(%arg0: i32) -> (i32, i32) {
    %c0_i32 = arith.constant 0 : i32
    %c0_i32_0 = arith.constant 0 : i32
    %c0_i32_1 = arith.constant 0 : i32
    return %c0_i32, %c0_i32_0 : i32, i32
  }
  func.func @transform_3(%arg0: i32) -> (i32, i32) {
    %c0_i32 = arith.constant 0 : i32
    %c0_i32_0 = arith.constant 0 : i32
    %c0_i32_1 = arith.constant 0 : i32
    return %c0_i32, %c0_i32_0 : i32, i32
  }
  func.func @transform_4(%arg0: i32) -> (i32, i32) {
    %c0_i32 = arith.constant 0 : i32
    %c0_i32_0 = arith.constant 0 : i32
    %c0_i32_1 = arith.constant 0 : i32
    return %c0_i32, %c0_i32_0 : i32, i32
  }
  func.func @transform_5(%arg0: i32) -> (i32, i32) {
    %c0_i32 = arith.constant 0 : i32
    %c0_i32_0 = arith.constant 0 : i32
    %c0_i32_1 = arith.constant 0 : i32
    return %c0_i32, %c0_i32_0 : i32, i32
  }
  func.func @transform_6(%arg0: i32) -> (i32, i32) {
    %c0_i32 = arith.constant 0 : i32
    %c0_i32_0 = arith.constant 0 : i32
    %c0_i32_1 = arith.constant 0 : i32
    return %c0_i32, %c0_i32_0 : i32, i32
  }
  func.func @transform_7(%arg0: i32) -> (i32, i32) {
    %c0_i32 = arith.constant 0 : i32
    %c0_i32_0 = arith.constant 0 : i32
    %c0_i32_1 = arith.constant 0 : i32
    return %c0_i32, %c0_i32_0 : i32, i32
  }
  func.func @transform_8(%arg0: i32) -> (i32, i32) {
    %c0_i32 = arith.constant 0 : i32
    %c0_i32_0 = arith.constant 0 : i32
    %c0_i32_1 = arith.constant 0 : i32
    return %c0_i32, %c0_i32_0 : i32, i32
  }
  func.func @transform_9(%arg0: i32) -> (i32, i32) {
    %c0_i32 = arith.constant 0 : i32
    %c0_i32_0 = arith.constant 0 : i32
    %c0_i32_1 = arith.constant 0 : i32
    return %c0_i32, %c0_i32_0 : i32, i32
  }
  func.func @transform_10(%arg0: i32) -> (i32, i32) {
    %c0_i32 = arith.constant 0 : i32
    %c0_i32_0 = arith.constant 0 : i32
    %c0_i32_1 = arith.constant 0 : i32
    return %c0_i32, %c0_i32_0 : i32, i32
  }
  func.func @transform_11(%arg0: i32) -> (i32, i32) {
    %c0_i32 = arith.constant 0 : i32
    %c0_i32_0 = arith.constant 0 : i32
    return %c0_i32, %arg0 : i32, i32
  }
}

</mosaic_0001>

<bundles_post_ra>
// kernel: homo_forward.1
= control target key start
LH: loop header
LB: loop body
LE: loop exit
PB: predicated region body
PF: predicated region fallthrough
CT: control target
= control target key end

     0   :  { %s1753_s0 = inlined_call_operand.vmem [shape: f32[2,512], index: 0, kind: input, shape index: {}]   ;;  %s1754_s1 = inlined_call_operand.vmem [shape: f32[32,2], index: 1, kind: input, shape index: {}]   ;;  %s1755_s2 = inlined_call_operand.vmem [shape: f32[32,1], index: 2, kind: input, shape index: {}]   ;;  %s1756_s3 = inlined_call_operand.vmem [shape: f32[32,32], index: 3, kind: input, shape index: {}]   ;;  %s1757_s4 = inlined_call_operand.vmem [shape: f32[32,1], index: 4, kind: input, shape index: {}]   ;;  %s1758_s5 = inlined_call_operand.vmem [shape: f32[32,32], index: 5, kind: input, shape index: {}]   ;;  %s1759_s6 = inlined_call_operand.vmem [shape: f32[32,1], index: 6, kind: input, shape index: {}]   ;;  %s1760_s7 = inlined_call_operand.vmem [shape: f32[32,32], index: 7, kind: input, shape index: {}]   ;;  %s1761_s8 = inlined_call_operand.vmem [shape: f32[32,1], index: 8, kind: input, shape index: {}]   ;;  %s1762_s9 = inlined_call_operand.vmem [shape: f32[1,32], index: 9, kind: input, shape index: {}]   ;;  %s1763_s10 = inlined_call_operand.<no memory space> [shape: f32[1,1], index: 10, kind: input, shape index: {}]   ;;  %s1764_s11 = inlined_call_operand.hbm [shape: f32[1,512], index: 11, kind: output, shape index: {}]  }
   0x1   :  { %v16_v0 = vstv %s1763_s10 }
   0x2   :  { %17 = vst [vmem:[#allocation2] sm:$0x1] %v16_v0 }
   0x3   :  { %18 = vsyncpa [#allocation4], 0 }
   0x4   :  { %20 = vsyncpa [#allocation4 + $0x1], 0  ;;  %s1457_s19 = smov 0   ;;  %s1459_s20 = smov 0  }
   0x5   :  { %s1461_s21 = smov 0   ;;  %s1463_s22 = smov 0  }
   0x6 LB: > { %s1478_s10 = sadd.s32 4294967295, %s1388_s22   ;;  %s1153_s23 = sadd.s32 4294967294, %s1388_s22   ;;  %s1388_s22 = sphi %s1463_s22, %s1770_s22   ;;  %s1384_s21 = sphi %s1461_s21, %s1769_s21   ;;  %s1380_s20 = sphi %s1459_s20, %s1768_s20   ;;  %s1376_s19 = sphi %s1457_s19, %s1767_s19  }
   0x7   : > { %s1482_s24 = sadd.s32 1, %s1388_s22   ;;  %s269_s25 = sadd.s32 1, %s1384_s21 }
   0x8   : > { %s266_s26 = ssub.s32 %s1388_s22, %s1482_s24  ;;  %p279_p0 = scmp.ne.s32.totalorder %s1384_s21, %s1380_s20 }
   0x9   : > { %p267_p1 = scmp.eq.s32.totalorder %s266_s26, 0  ;;  %p280_p2 = scmp.eq.s32.totalorder %s1478_s10, 1 }
   0xa   : > { %p285_p3 = scmp.ne.s32.totalorder %s1380_s20, %s1376_s19  ;;  %p286_p4 = scmp.eq.s32.totalorder %s1153_s23, 1 }
   0xb   : > { %s1493_s27 = scalar_select %p267_p1, %s1384_s21, %s269_s25  }
   0xc   : > { %p1495_p5 = por %p280_p2, %p279_p0  ;;  %p1499_p6 = por %p286_p4, %p285_p3 }
   0xd   : > { %p1156_p7 = scmp.ge.s32.totalorder %s1388_s22, 1  ;;  %p343_p8 = scmp.lt.s32.totalorder %s1388_s22, 3 }
   0xf   : > { %p344_p9 = pnand %p1156_p7, %p343_p8 }
  0x10   : > { %s1158_s30 = sshll.u32 (!%p344_p9), %s1478_s10, 1  ;;  %v1390_v1 = vmov (!%p344_p9), 0.0   ;;  %v395_v2 = vld [vmem:[%s1755_s2] sm:$0xff] (!%p344_p9)  ;;  %v1391_v3 = vmov (!%p344_p9), 0   ;;  %v397_v4 = vld [vmem:[%s1755_s2 + $0x10] sm:$0xff] (!%p344_p9)  ;;  %v396_v5 = vld [vmem:[%s1755_s2 + $0x8] sm:$0xff] (!%p344_p9) }
  0x11   : > { %347 = sbr.rel (%p344_p9) target bundleno = 1247 (0x4df), region = 64  ;;  %p384_p10 = scmp.lt.s32.totalorder (!%p344_p9), %s1158_s30, 3  ;;  %510 = vmatprep.mubr.f32.mxu0 (!%p344_p9), %v1390_v1  ;;  %648 = vmatprep.mubr.f32.mxu1 (!%p344_p9), %v1390_v1  ;;  %v398_v6 = vld [vmem:[%s1755_s2 + $0x18] sm:$0xff] (!%p344_p9)  ;;  %vm441_vm0 = vcmask (!%p344_p9), 1041408   ;;  %v547_v9 = vld [vmem:[%s1757_s4] sm:$0xff] (!%p344_p9)  ;;  %vm428_vm1 = vcmask (!%p344_p9), 15360  }
  0x12   : > { %1260 = vset.pattern.permute.xlu0 (!%p344_p9), %v1391_v3  ;;  %1261 = vset.pattern.permute.xlu1 (!%p344_p9), %v1391_v3  ;;  %v391_v10 = vld [vmem:[%s1754_s1] sm:$0xff] (!%p344_p9)  ;;  %v548_v11 = vld [vmem:[%s1757_s4 + $0x8] sm:$0xff] (!%p344_p9)  ;;  %v549_v12 = vld [vmem:[%s1757_s4 + $0x10] sm:$0xff] (!%p344_p9)  ;;  %vm571_vm2 = vcmask (!%p344_p9), 261120   ;;  %s380_s17 = sand.u32 (!%p344_p9), 1, %s1380_s20  }
  0x13   : > { %401 = vperm.xlu0 (!%p344_p9), %1260, %v395_v2   ;;  %411 = vperm.xlu1 (!%p344_p9), %1261, %v397_v4   ;;  %v392_v13 = vld [vmem:[%s1754_s1 + $0x8] sm:$0xff] (!%p344_p9)  ;;  %v550_v14 = vld [vmem:[%s1757_s4 + $0x18] sm:$0xff] (!%p344_p9)  ;;  %v685_v15 = vld [vmem:[%s1759_s6] sm:$0xff] (!%p344_p9)  ;;  %s1157_s18 = sshll.u32 (!%p344_p9), %s380_s17, 1  ;;  %s1080_s14 = scalar_lea.sflag (!%p344_p9), [#allocation4], %s380_s17 }
  0x14   : > { %v393_v16 = vld [vmem:[%s1754_s1 + $0x10] sm:$0xff] (!%p344_p9)  ;;  %v686_v17 = vld [vmem:[%s1759_s6 + $0x8] sm:$0xff] (!%p344_p9)  ;;  %v394_v19 = vld [vmem:[%s1754_s1 + $0x18] sm:$0xff] (!%p344_p9)  ;;  %s382_s23 = scalar_lea.vmem (!%p344_p9), [#allocation3], %s1157_s18 }
  0x15   : > { %v687_v18 = vld [vmem:[%s1759_s6 + $0x10] sm:$0xff] (!%p344_p9)  ;;  %v688_v20 = vld [vmem:[%s1759_s6 + $0x18] sm:$0xff] (!%p344_p9)  ;;  %v830_v21 = vld [vmem:[%s1761_s8] sm:$0xff] (!%p344_p9) }
  0x16   : > { %v831_v22 = vld [vmem:[%s1761_s8 + $0x8] sm:$0xff] (!%p344_p9)  ;;  %v832_v23 = vld [vmem:[%s1761_s8 + $0x10] sm:$0xff] (!%p344_p9)  ;;  %v833_v24 = vld [vmem:[%s1761_s8 + $0x18] sm:$0xff] (!%p344_p9) }
  0x17   : > { %406 = vperm.xlu0 (!%p344_p9), %1260, %v396_v5   ;;  %416 = vperm.xlu1 (!%p344_p9), %1261, %v398_v6   ;;  %v972_v25 = vld [vmem:[#allocation2] sm:$0x1] (!%p344_p9)  ;;  %v544_v59 = vld [vmem:[%s1756_s3 + $0x8] sm:$0xff] (!%p344_p9)  ;;  %v545_v60 = vld [vmem:[%s1756_s3 + $0x10] sm:$0xff] (!%p344_p9) }
  0x18   : > { %s1772_s30 = smov (!%p384_p10, %s1158_s30), 3  ;;  %v543_v58 = vld [vmem:[%s1756_s3] sm:$0xff]  ;;  %v546_v61 = vld [vmem:[%s1756_s3 + $0x18] sm:$0xff] }
  0x19   : > { %s1159_s25 = sshll.u32 %s1772_s30, 1  ;;  %s1185_s30 = sshll.u32 %s1478_s10, 5 }
  0x1a   : > { %s387_s13 = scalar_lea.vmem %s1753_s0, %s1159_s25  ;;  %s1094_s25 = sshll.u32 %s382_s23, 4  ;;  %s1713_s25 = int_to_ptr.vmem [resolvable:$true] %s1094_s25 }
  0x1b   : > { %v1160_v7 = vld.sshfl [vmem:[%s387_s13] sm:$0x33 pattern:$0x76325410]  ;;  %553 = vperm.xlu0 %1260, %v547_v9   ;;  %558 = vperm.xlu1 %1261, %v548_v11   ;;  %s1711_s13 = scalar_lea.hbm %s1764_s11, %s1185_s30  ;;  %s1326_s15 = scalar_lea.vmem %s1713_s25, 32 }
  0x1c   : > { %v427_v8 = vcombine.high %v1160_v7, %v1160_v7  ;;  %p1327_p11 = scmp.ne.s32.totalorder %s1713_s25, %s1326_s15  ;;  %s1393_s10 = smov [#allocation3]  }
  0x1d   : > { %s1330_s16 = sshll.u32 %s1393_s10, 4  ;;  %s1331_s16 = int_to_ptr.vmem [resolvable:$false] %s1330_s16 }
  0x1e   : > { %1161 = vmatprep.subr.msk.mxu0 %vm441_vm0, %v427_v8  ;;  %p1328_p12 = pnand %p1327_p11, %p1495_p5  ;;  %s1332_s18 = scalar_lea.vmem %s1331_s16, 64 }
  0x1f   : > { %1162 = vmatpush1.msk.msra.mxu0 %vm441_vm0, %v1160_v7  ;;  %563 = vperm.xlu0 %1260, %v549_v12   ;;  %p1333_p0 = scmp.lt.s32.totalorder %s1713_s25, %s1331_s16  ;;  %p1334_p1 = scmp.lt.s32.totalorder %s1332_s18, %s1326_s15 }
  0x20   : > { %1163 = vmatmul.mubr.msk.f32.vlgmr.msra.gmra.mrb[0].mxu0 %vm428_vm1, %v391_v10  ;;  %568 = vperm.xlu1 %1261, %v550_v14   ;;  %p1329_p13 = pneg %p1328_p12 }
  0x21   : > { %516 = vmatprep.mubr.f32.mxu0 %v1390_v1  ;;  %p1335_p2 = por %p1334_p1, %p1333_p0 }
  0x23   : > { %691 = vperm.xlu0 %1260, %v685_v15   ;;  %p1336_p3 = pnand %p1335_p2, %p1329_p13 }
  0x24   : > { %1164 = vmatmul.mubr.msk.f32.gmra.mrb[2].mxu0 %vm428_vm1, %v392_v13  ;;  %696 = vperm.xlu1 %1261, %v686_v17  }
  0x25   : > { %522 = vmatprep.mubr.f32.mxu0 %v1390_v1 }
  0x27   : > { %701 = vperm.xlu0 %1260, %v687_v18  }
  0x28   : > { %1165 = vmatmul.mubr.msk.f32.gmra.mrb[4].mxu0 %vm428_vm1, %v393_v16  ;;  %706 = vperm.xlu1 %1261, %v688_v20  }
  0x29   : > { %528 = vmatprep.mubr.f32.mxu0 %v1390_v1 }
  0x2b   : > { %836 = vperm.xlu0 %1260, %v830_v21  }
  0x2c   : > { %1166 = vmatmul.mubr.msk.f32.gmra.mrb[6].mxu0 %vm428_vm1, %v394_v19  ;;  %841 = vperm.xlu1 %1261, %v831_v22  }
  0x2d   : > { %785 = vmatprep.mubr.f32.mxu0 %v1390_v1 }
  0x2f   : > { %846 = vperm.xlu0 %1260, %v832_v23  }
  0x30   : > { %851 = vperm.xlu1 %1261, %v833_v24  }
  0x33   : > { %975 = vperm.xlu0 %1260, %v972_v25  }
  0x92   : > { %v402_v26 = vpop.permute.xlu0 %401  ;;  %v412_v35 = vpop.permute.xlu1 %411 }
  0x96   : > { %v407_v30 = vpop.permute.xlu0 %406  ;;  %v417_v40 = vpop.permute.xlu1 %416 }
  0x9a   : > { %v554_v63 = vpop.permute.xlu0 %553  ;;  %v559_v3 = vpop.permute.xlu1 %558 }
  0x9e   : > { %v564_v10 = vpop.permute.xlu0 %563 }
  0x9f   : > { %v569_v13 = vpop.permute.xlu1 %568 }
  0xf3   : > { %v512_v27 = vpop.f32.mrb[0].mxu0 }
  0xf4   : > { %v514_v28 = vpop.f32.mrb[1].mxu0  ;;  %v513_v32 = vadd.f32 %v512_v27, %v402_v26 }
  0xf5   : > { %v515_v29 = vadd.f32 %v514_v28, %v402_v26 }
  0xf7   : > { %v518_v31 = vpop.f32.mrb[2].mxu0  ;;  %1262 = vtanh.f32 %v515_v29 }
  0xf8   : > { %v519_v33 = vadd.f32 %v518_v31, %v407_v30  ;;  %v520_v34 = vpop.f32.mrb[3].mxu0  ;;  %v681_v31 = vld [vmem:[%s1758_s5] sm:$0xff] }
  0xf9   : > { %v521_v36 = vadd.f32 %v520_v34, %v407_v30  ;;  %v684_v34 = vld [vmem:[%s1758_s5 + $0x18] sm:$0xff] }
  0xfa   : > { %1264 = vtanh.f32 %v519_v33  ;;  %v683_v33 = vld [vmem:[%s1758_s5 + $0x10] sm:$0xff] }
  0xfb   : > { %1266 = vtanh.f32 %v521_v36  ;;  %v524_v37 = vpop.f32.mrb[4].mxu0 }
  0xfc   : > { %1268 = vtanh.f32 %v513_v32  ;;  %v526_v38 = vpop.f32.mrb[5].mxu0  ;;  %v525_v42 = vadd.f32 %v524_v37, %v412_v35  ;;  %v682_v32 = vld [vmem:[%s1758_s5 + $0x8] sm:$0xff] }
  0xfd   : > { %v527_v39 = vadd.f32 %v526_v38, %v412_v35  ;;  %v692_v35 = vpop.permute.xlu0 %691 }
  0xff   : > { %v530_v41 = vpop.f32.mrb[6].mxu0  ;;  %1270 = vtanh.f32 %v527_v39 }
 0x100   : > { %v531_v43 = vadd.f32 %v530_v41, %v417_v40  ;;  %v532_v44 = vpop.f32.mrb[7].mxu0 }
 0x101   : > { %v533_v45 = vadd.f32 %v532_v44, %v417_v40  ;;  %v1579_v46 = vpop.eup %1262  ;;  %v697_v40 = vpop.permute.xlu1 %696 }
 0x102   : > { %1272 = vtanh.f32 %v531_v43 }
 0x103   : > { %1274 = vtanh.f32 %v533_v45  ;;  %v702_v45 = vpop.permute.xlu0 %701 }
 0x104   : > { %v1581_v47 = vpop.eup %1264  ;;  %1276 = vtanh.f32 %v525_v42 }
 0x105   : > { %v1583_v48 = vpop.eup %1266 }
 0x106   : > { %v1585_v49 = vpop.eup %1268  ;;  %v1186_v50 = vpack.c.bf16 %v1583_v48, %v1579_v46 }
 0x107   : > { %v1188_v51 = vpack.c.bf16 %v1581_v47, %v1585_v49 }
 0x108   : > { %1187 = vmatprep.subr.bf16.mxu1 %v1186_v50 }
 0x109   : > { %1189 = vmatpush1.bf16.msra.mxu1 %v1188_v51  ;;  %v1591_v52 = vpop.eup %1270 }
 0x10c   : > { %v1593_v53 = vpop.eup %1272 }
 0x10d   : > { %v1595_v54 = vpop.eup %1274 }
 0x10e   : > { %v1597_v55 = vpop.eup %1276  ;;  %v1190_v56 = vpack.c.bf16 %v1595_v54, %v1591_v52 }
 0x10f   : > { %v1192_v57 = vpack.c.bf16 %v1593_v53, %v1597_v55 }
 0x110   : > { %1191 = vmatprep.subr.bf16.mxu1 %v1190_v56 }
 0x111   : > { %1193 = vmatpush1.bf16.msra.mxu1 %v1192_v57 }
 0x114   : > { %1167 = vmatmul.mubr.msk.f32.vlgmr.msra.gmra.mrb[0].mxu1 %vm571_vm2, %v543_v58  ;;  %v707_v58 = vpop.permute.xlu1 %706 }
 0x115   : > { %654 = vmatprep.mubr.f32.mxu1 %v1390_v1 }
 0x118   : > { %1168 = vmatmul.mubr.msk.f32.gmra.mrb[2].mxu1 %vm571_vm2, %v544_v59 }
 0x119   : > { %660 = vmatprep.mubr.f32.mxu1 %v1390_v1 }
 0x11c   : > { %1169 = vmatmul.mubr.msk.f32.gmra.mrb[4].mxu1 %vm571_vm2, %v545_v60 }
 0x11d   : > { %666 = vmatprep.mubr.f32.mxu1 %v1390_v1 }
 0x120   : > { %1170 = vmatmul.mubr.msk.f32.gmra.mrb[6].mxu1 %vm571_vm2, %v546_v61 }
 0x121   : > { %930 = vmatprep.mubr.f32.mxu1 %v1390_v1 }
 0x1e7   : > { %v650_v62 = vpop.f32.mrb[0].mxu1 }
 0x1e8   : > { %v652_v0 = vpop.f32.mrb[1].mxu1  ;;  %v651_v5 = vadd.f32 %v650_v62, %v554_v63 }
 0x1e9   : > { %v653_v2 = vadd.f32 %v652_v0, %v554_v63 }
 0x1eb   : > { %v656_v4 = vpop.f32.mrb[2].mxu1  ;;  %1278 = vtanh.f32 %v653_v2 }
 0x1ec   : > { %v657_v6 = vadd.f32 %v656_v4, %v559_v3  ;;  %v658_v7 = vpop.f32.mrb[3].mxu1 }
 0x1ed   : > { %v659_v8 = vadd.f32 %v658_v7, %v559_v3 }
 0x1ee   : > { %1280 = vtanh.f32 %v657_v6 }
 0x1ef   : > { %1282 = vtanh.f32 %v659_v8  ;;  %v662_v9 = vpop.f32.mrb[4].mxu1 }
 0x1f0   : > { %1284 = vtanh.f32 %v651_v5  ;;  %v664_v11 = vpop.f32.mrb[5].mxu1  ;;  %v663_v15 = vadd.f32 %v662_v9, %v564_v10 }
 0x1f1   : > { %v665_v12 = vadd.f32 %v664_v11, %v564_v10 }
 0x1f3   : > { %v668_v14 = vpop.f32.mrb[6].mxu1  ;;  %1286 = vtanh.f32 %v665_v12 }
 0x1f4   : > { %v669_v16 = vadd.f32 %v668_v14, %v569_v13  ;;  %v670_v17 = vpop.f32.mrb[7].mxu1 }
 0x1f5   : > { %v671_v18 = vadd.f32 %v670_v17, %v569_v13  ;;  %v1623_v19 = vpop.eup %1278 }
 0x1f6   : > { %1288 = vtanh.f32 %v669_v16 }
 0x1f7   : > { %1290 = vtanh.f32 %v671_v18 }
 0x1f8   : > { %v1625_v20 = vpop.eup %1280  ;;  %1292 = vtanh.f32 %v663_v15 }
 0x1f9   : > { %v1627_v21 = vpop.eup %1282 }
 0x1fa   : > { %v1629_v22 = vpop.eup %1284  ;;  %v1194_v23 = vpack.c.bf16 %v1627_v21, %v1623_v19 }
 0x1fb   : > { %v1196_v24 = vpack.c.bf16 %v1625_v20, %v1629_v22 }
 0x1fc   : > { %1195 = vmatprep.subr.bf16.mxu0 %v1194_v23 }
 0x1fd   : > { %1197 = vmatpush1.bf16.msra.mxu0 %v1196_v24  ;;  %v1635_v25 = vpop.eup %1286 }
 0x200   : > { %v1637_v26 = vpop.eup %1288 }
 0x201   : > { %v1639_v27 = vpop.eup %1290 }
 0x202   : > { %v1641_v28 = vpop.eup %1292  ;;  %v1198_v29 = vpack.c.bf16 %v1639_v27, %v1635_v25 }
 0x203   : > { %v1200_v30 = vpack.c.bf16 %v1637_v26, %v1641_v28 }
 0x204   : > { %1199 = vmatprep.subr.bf16.mxu0 %v1198_v29  ;;  %v842_v29 = vpop.permute.xlu1 %841 }
 0x205   : > { %1201 = vmatpush1.bf16.msra.mxu0 %v1200_v30 }
 0x208   : > { %1171 = vmatmul.mubr.msk.f32.vlgmr.msra.gmra.mrb[8].mxu0 %vm571_vm2, %v681_v31 }
 0x209   : > { %791 = vmatprep.mubr.f32.mxu0 %v1390_v1 }
 0x20c   : > { %1172 = vmatmul.mubr.msk.f32.gmra.mrb[10].mxu0 %vm571_vm2, %v682_v32 }
 0x20d   : > { %797 = vmatprep.mubr.f32.mxu0 %v1390_v1 }
 0x210   : > { %1173 = vmatmul.mubr.msk.f32.gmra.mrb[12].mxu0 %vm571_vm2, %v683_v33 }
 0x211   : > { %803 = vmatprep.mubr.f32.mxu0 %v1390_v1 }
 0x214   : > { %1174 = vmatmul.mubr.msk.f32.gmra.mrb[14].mxu0 %vm571_vm2, %v684_v34 }
 0x215   : > { %1049 = vmatprep.mubr.f32.mxu0 %v1390_v1 }
 0x2db   : > { %v787_v36 = vpop.f32.mrb[8].mxu0 }
 0x2dc   : > { %v788_v37 = vadd.f32 %v787_v36, %v692_v35  ;;  %v789_v38 = vpop.f32.mrb[9].mxu0 }
 0x2dd   : > { %v790_v39 = vadd.f32 %v789_v38, %v692_v35  ;;  %v852_v38 = vpop.permute.xlu1 %851 }
 0x2de   : > { %1294 = vtanh.f32 %v788_v37 }
 0x2df   : > { %v793_v41 = vpop.f32.mrb[10].mxu0  ;;  %1296 = vtanh.f32 %v790_v39 }
 0x2e0   : > { %v794_v42 = vadd.f32 %v793_v41, %v697_v40  ;;  %v795_v43 = vpop.f32.mrb[11].mxu0 }
 0x2e1   : > { %v796_v44 = vadd.f32 %v795_v43, %v697_v40 }
 0x2e2   : > { %1298 = vtanh.f32 %v794_v42 }
 0x2e3   : > { %1300 = vtanh.f32 %v796_v44  ;;  %v799_v50 = vpop.f32.mrb[12].mxu0 }
 0x2e4   : > { %v800_v51 = vadd.f32 %v799_v50, %v702_v45  ;;  %v801_v56 = vpop.f32.mrb[13].mxu0 }
 0x2e5   : > { %v802_v57 = vadd.f32 %v801_v56, %v702_v45 }
 0x2e6   : > { %1302 = vtanh.f32 %v800_v51 }
 0x2e7   : > { %v805_v59 = vpop.f32.mrb[14].mxu0  ;;  %1304 = vtanh.f32 %v802_v57 }
 0x2e8   : > { %v806_v60 = vadd.f32 %v805_v59, %v707_v58  ;;  %v807_v61 = vpop.f32.mrb[15].mxu0  ;;  %v1295_v63 = vpop.eup %1294 }
 0x2e9   : > { %v808_v62 = vadd.f32 %v807_v61, %v707_v58  ;;  %v1297_v0 = vpop.eup %1296  ;;  %v818_v4 = vadd.f32 %v1295_v63, %v1585_v49 }
 0x2ea   : > { %1306 = vtanh.f32 %v806_v60  ;;  %v819_v6 = vadd.f32 %v1297_v0, %v1579_v46 }
 0x2eb   : > { %1308 = vtanh.f32 %v808_v62 }
 0x2ec   : > { %v1299_v2 = vpop.eup %1298 }
 0x2ed   : > { %v1301_v3 = vpop.eup %1300  ;;  %v820_v5 = vadd.f32 %v1299_v2, %v1581_v47 }
 0x2ee   : > { %v821_v7 = vadd.f32 %v1301_v3, %v1583_v48  ;;  %v826_v48 = vld [vmem:[%s1760_s7] sm:$0xff] }
 0x2ef   : > { %v1204_v8 = vpack.c.bf16 %v820_v5, %v818_v4  ;;  %v978_v5 = vlaneseq }
 0x2f0   : > { %v1202_v9 = vpack.c.bf16 %v821_v7, %v819_v6  ;;  %v1303_v10 = vpop.eup %1302  ;;  %v1392_v6 = vmov 1966171168  }
 0x2f1   : > { %v1305_v11 = vpop.eup %1304  ;;  %v822_v14 = vadd.f32 %v1303_v10, %v1597_v55  ;;  %v837_v55 = vpop.permute.xlu0 %836  ;;  %v1060_v7 = vunpack.c.l.s4 %v1392_v6  ;;  %vm1076_vm3 = vcmp.lt.s32.totalorder %v978_v5, 256 }
 0x2f2   : > { %1203 = vmatprep.subr.bf16.mxu1 %v1202_v9  ;;  %v823_v49 = vadd.f32 %v1305_v11, %v1591_v52  ;;  %v828_v52 = vld [vmem:[%s1760_s7 + $0x10] sm:$0xff] }
 0x2f3   : > { %1205 = vmatpush1.bf16.msra.mxu1 %v1204_v8 }
 0x2f4   : > { %v1307_v12 = vpop.eup %1306 }
 0x2f5   : > { %v1309_v13 = vpop.eup %1308  ;;  %v824_v15 = vadd.f32 %v1307_v12, %v1593_v53  ;;  %v827_v53 = vld [vmem:[%s1760_s7 + $0x8] sm:$0xff] }
 0x2f6   : > { %v825_v47 = vadd.f32 %v1309_v13, %v1595_v54  ;;  %v829_v54 = vld [vmem:[%s1760_s7 + $0x18] sm:$0xff] }
 0x2f7   : > { %v1208_v16 = vpack.c.bf16 %v824_v15, %v822_v14 }
 0x2f8   : > { %v1206_v46 = vpack.c.bf16 %v825_v47, %v823_v49 }
 0x2fa   : > { %1207 = vmatprep.subr.bf16.mxu1 %v1206_v46 }
 0x2fb   : > { %1209 = vmatpush1.bf16.msra.mxu1 %v1208_v16 }
 0x2fe   : > { %1175 = vmatmul.mubr.msk.f32.vlgmr.msra.gmra.mrb[8].mxu1 %vm571_vm2, %v826_v48 }
 0x2ff   : > { %936 = vmatprep.mubr.f32.mxu1 %v1390_v1 }
 0x302   : > { %1176 = vmatmul.mubr.msk.f32.gmra.mrb[10].mxu1 %vm571_vm2, %v827_v53 }
 0x303   : > { %942 = vmatprep.mubr.f32.mxu1 %v1390_v1 }
 0x306   : > { %1177 = vmatmul.mubr.msk.f32.gmra.mrb[12].mxu1 %vm571_vm2, %v828_v52 }
 0x307   : > { %948 = vmatprep.mubr.f32.mxu1 %v1390_v1  ;;  %v847_v1 = vpop.permute.xlu0 %846 }
 0x30a   : > { %1178 = vmatmul.mubr.msk.f32.gmra.mrb[14].mxu1 %vm571_vm2, %v829_v54 }
 0x30b   : > { %v976_v8 = vpop.permute.xlu0 %975 }
 0x3d1   : > { %v932_v17 = vpop.f32.mrb[8].mxu1 }
 0x3d2   : > { %v933_v18 = vadd.f32 %v932_v17, %v837_v55  ;;  %v934_v23 = vpop.f32.mrb[9].mxu1 }
 0x3d3   : > { %v935_v24 = vadd.f32 %v934_v23, %v837_v55 }
 0x3d4   : > { %1310 = vtanh.f32 %v933_v18 }
 0x3d5   : > { %v938_v30 = vpop.f32.mrb[10].mxu1  ;;  %1312 = vtanh.f32 %v935_v24 }
 0x3d6   : > { %v939_v31 = vadd.f32 %v938_v30, %v842_v29  ;;  %v940_v32 = vpop.f32.mrb[11].mxu1 }
 0x3d7   : > { %v941_v33 = vadd.f32 %v940_v32, %v842_v29 }
 0x3d8   : > { %1314 = vtanh.f32 %v939_v31 }
 0x3d9   : > { %1316 = vtanh.f32 %v941_v33  ;;  %v944_v34 = vpop.f32.mrb[12].mxu1 }
 0x3da   : > { %v945_v35 = vadd.f32 %v944_v34, %v847_v1  ;;  %v946_v36 = vpop.f32.mrb[13].mxu1 }
 0x3db   : > { %v947_v37 = vadd.f32 %v946_v36, %v847_v1 }
 0x3dc   : > { %1318 = vtanh.f32 %v945_v35 }
 0x3dd   : > { %v950_v39 = vpop.f32.mrb[14].mxu1  ;;  %1320 = vtanh.f32 %v947_v37 }
 0x3de   : > { %v951_v40 = vadd.f32 %v950_v39, %v852_v38  ;;  %v952_v41 = vpop.f32.mrb[15].mxu1  ;;  %v1311_v43 = vpop.eup %1310 }
 0x3df   : > { %v953_v42 = vadd.f32 %v952_v41, %v852_v38  ;;  %v1313_v44 = vpop.eup %1312  ;;  %v963_v51 = vadd.f32 %v1311_v43, %v1629_v22 }
 0x3e0   : > { %1322 = vtanh.f32 %v951_v40  ;;  %v964_v57 = vadd.f32 %v1313_v44, %v1623_v19 }
 0x3e1   : > { %1324 = vtanh.f32 %v953_v42 }
 0x3e2   : > { %v1315_v45 = vpop.eup %1314 }
 0x3e3   : > { %v1317_v50 = vpop.eup %1316  ;;  %v965_v56 = vadd.f32 %v1315_v45, %v1625_v20 }
 0x3e4   : > { %v966_v58 = vadd.f32 %v1317_v50, %v1627_v21  ;;  %v971_v21 = vld [vmem:[%s1762_s9] sm:$0x1] }
 0x3e5   : > { %v1212_v59 = vpack.c.bf16 %v965_v56, %v963_v51 }
 0x3e6   : > { %v1210_v60 = vpack.c.bf16 %v966_v58, %v964_v57  ;;  %v1319_v61 = vpop.eup %1318 }
 0x3e7   : > { %v1321_v62 = vpop.eup %1320  ;;  %v967_v2 = vadd.f32 %v1319_v61, %v1641_v28  ;;  %v979_v28 = vshrl.u32 %v978_v5, 7 }
 0x3e8   : > { %1211 = vmatprep.subr.bf16.mxu0 %v1210_v60  ;;  %v968_v22 = vadd.f32 %v1321_v62, %v1635_v25  ;;  %v1061_v25 = vunpack.c.0.s8 %v1060_v7 }
 0x3e9   : > { %1213 = vmatpush1.bf16.msra.mxu0 %v1212_v59 }
 0x3ea   : > { %v1323_v63 = vpop.eup %1322  ;;  %v1064_v13 = vsub.s32 %v1061_v25, %v979_v28 }
 0x3eb   : > { %v1325_v0 = vpop.eup %1324  ;;  %v969_v3 = vadd.f32 %v1323_v63, %v1637_v26  ;;  %v980_v26 = vsub.s32 0, %v979_v28 }
 0x3ec   : > { %v970_v20 = vadd.f32 %v1325_v0, %v1639_v27 }
 0x3ed   : > { %v1216_v19 = vpack.c.bf16 %v969_v3, %v967_v2  ;;  %v981_v27 = vrot.slane %v976_v8, %v980_v26 }
 0x3ee   : > { %v1214_v4 = vpack.c.bf16 %v970_v20, %v968_v22 }
 0x3f0   : > { %1215 = vmatprep.subr.bf16.mxu0 %v1214_v4 }
 0x3f1   : > { %1217 = vmatpush1.bf16.msra.mxu0 %v1216_v19 }
 0x3f4   : > { %1179 = vmatmul.mubr.msk.f32.vlgmr.msra.gmra.mrb[16].mxu0 %vm571_vm2, %v971_v21 }
 0x4c7   : > { %v1051_v9 = vpop.f32.mrb[16].mxu0 }
 0x4c8   : > { %v1052_v10 = vadd.f32 %v1051_v9, %v981_v27  ;;  %v1053_v11 = vpop.f32.mrb[17].mxu0 }
 0x4c9   : > { %v1054_v12 = vadd.f32 %v1053_v11, %v981_v27 }
 0x4cb   : > { %v1058_v14 = vcombine.low %v1052_v10, %v1054_v12 }
 0x4cd   : > { %v1065_v15 = vrot.slane %v1058_v14, %v1064_v13 }
 0x4cf   : > { %v1072_v49 = vrot.slane %v1065_v15, %v1064_v13 }
 0x4d1   : > { %1078 = vst.msk [vmem:[%s382_s23] sm:$0x3] %vm1076_vm3, %v1072_v49 }
 0x4d2   : > { %1339 = shalt.err (!%p1336_p3)
}
 0x4d3   : > { %s1340_s17 = scalar_lea.hbm %s1711_s13, 32  ;;  %s1344_s26 = scalar_lea.hbm %s1764_s11, 64 }
 0x4d4   : > { %p1341_p4 = scmp.ne.s32.totalorder %s1711_s13, %s1340_s17  ;;  %p1345_p9 = scmp.lt.u32.totalorder %s1711_s13, %s1764_s11 }
 0x4d5   : > { %p1346_p10 = scmp.lt.u32.totalorder %s1344_s26, %s1340_s17  ;;  %p1348_p12 = scmp.lt.u32.totalorder %s1340_s17, %s1711_s13 }
 0x4d6   : > { %p1342_p7 = pnand %p1341_p4, %p1495_p5 }
 0x4d7   : > { %p1347_p11 = por %p1346_p10, %p1345_p9 }
 0x4d8   : > { %p1343_p8 = pneg %p1342_p7 }
 0x4d9   : > { %p1349_p13 = por %p1348_p12, %p1347_p11 }
 0x4db   : > { %p1350_p0 = pnand %p1349_p13, %p1343_p8 }
 0x4dd   : > { %1353 = shalt.err (!%p1350_p0)
}
 0x4de   : > { %1218 = dma.vmem_to_hbm [thread:$0]  (%p1495_p5), %s1713_s25, 32, %s1711_s13, %s1080_s14  }
 0x4df PF: > { %p1224_p1 = scmp.ge.s32.totalorder %s1388_s22, 2  ;;  %s1106_s15 = sand.u32 1, %s1376_s19  }
 0x4e0   : > { %s1107_s16 = scalar_lea.sflag [#allocation4], %s1106_s15 }
 0x4e1   : > { %p1221_p2 = pnand %p1224_p1, %p1499_p6 }
 0x4e3   : > { %1371 = dma.done.wait (!%p1221_p2), %s1107_s16, 32  }
 0x4e4   : > { %1373 = vsyncadd (!%p1221_p2), %s1107_s16, 4294967264  ;;  %p23_p3 = scmp.ge.s32.totalorder %s1482_s24, 4   ;;  %s1767_s19 = smov %s1380_s20 }
 0x4e5   : > { %s1768_s20 = smov %s1384_s21  ;;  %s1769_s21 = smov %s1493_s27 }
 0x4e6   : > { %s1770_s22 = smov %s1482_s24  ;;  %25 = sbr.rel (!%p23_p3) target bundleno = 6 (0x6), region = 99 }
 0x4ed   :  { %1112 = vsyncpa [#allocation4], 1 }
 0x4ee   :  { %1114 = vsyncpa [#allocation4 + $0x1], 1 }

</bundles_post_ra>
